<compile_context>
chip_gen: v6e
topology: v6e:2x2x1
jax: 0.10.0
libtpu: 0.0.40
codegen_flags: <defaults>
</compile_context>

<pallas_src>
import functools

import jax
import jax.numpy as jnp
from jax.experimental import pallas as pl
from jax.experimental.pallas import tpu as pltpu

_LANE = 128  # lane width / MXU tile; also a multiple of every sublane width.


def _round_up(v, m):
    return (v + m - 1) // m * m


def _pad2d(a, rows, cols, dtype):
    r, c = a.shape
    return jnp.pad(a.astype(dtype), ((0, rows - r), (0, cols - c)))


def _full_spec(shape):
    # A single full-array block resident in VMEM (index map ignores grid ids).
    return pl.BlockSpec(shape, lambda *_: (0,) * len(shape))


def _vmem_capacity_bytes():
    try:
        return int(pltpu.get_tpu_info().vmem_capacity_bytes)
    except Exception:
        return 64 * 1024 * 1024  # conservative fallback: v7x per-TC VMEM


def _vmem_limit(cap, need_bytes):
    # Generous headroom, clamped to physical capacity.
    return int(min(cap, max(need_bytes + (8 << 20), 32 << 20)))


# ----------------------------------------------------------------------------
# Fused path: whole GCN forward in one kernel.
# ----------------------------------------------------------------------------
def _fused_gcn_kernel(*refs, layer_dims, relu_flags, matmul_dtype):
    """refs = (adj, x, w0, b0, w1, b1, ..., out, h_scratch)."""
    n_layers = len(layer_dims)
    adj_ref, x_ref = refs[0], refs[1]
    wb_refs = refs[2:2 + 2 * n_layers]
    o_ref = refs[2 + 2 * n_layers]
    h_ref = refs[3 + 2 * n_layers]

    adj = adj_ref[...]  # already matmul_dtype (host-cast); loaded once.

    for i in range(n_layers):  # statically unrolled
        f_in_p, f_out_p = layer_dims[i]
        w = wb_refs[2 * i][...]            # matmul_dtype
        b = wb_refs[2 * i + 1][...]        # (1, f_out_p), f32

        h = x_ref[...] if i == 0 else h_ref[:, :f_in_p]

        # Run the O(N^2) adjacency matmul at the narrower feature width.
        if f_out_p <= f_in_p:
            hw = jnp.dot(h, w, preferred_element_type=jnp.float32)
            y = jnp.dot(adj, hw.astype(matmul_dtype),
                        preferred_element_type=jnp.float32)
        else:
            ah = jnp.dot(adj, h, preferred_element_type=jnp.float32)
            y = jnp.dot(ah.astype(matmul_dtype), w,
                        preferred_element_type=jnp.float32)

        y = y + b                          # f32 epilogue on the VPU
        if relu_flags[i]:
            y = jnp.maximum(y, 0.0)

        if i == n_layers - 1:
            o_ref[...] = y.astype(o_ref.dtype)
        else:
            h_ref[:, :f_out_p] = y.astype(h_ref.dtype)  # stays in VMEM


# ----------------------------------------------------------------------------
# Tiled path kernels.
# ----------------------------------------------------------------------------
def _rowmm_kernel(x_ref, w_ref, b_ref, o_ref, *, add_bias, relu):
    y = jnp.dot(x_ref[...], w_ref[...], preferred_element_type=jnp.float32)
    if add_bias:
        y = y + b_ref[...]
    if relu:
        y = jnp.maximum(y, 0.0)
    o_ref[...] = y.astype(o_ref.dtype)


def _adjmm_kernel(adj_ref, m_ref, b_ref, o_ref, acc_ref, *, add_bias, relu):
    k = pl.program_id(1)

    @pl.when(k == 0)
    def _():
        acc_ref[...] = jnp.zeros_like(acc_ref)

    acc_ref[...] += jnp.dot(adj_ref[...], m_ref[...],
                            preferred_element_type=jnp.float32)

    @pl.when(k == pl.num_programs(1) - 1)
    def _():
        y = acc_ref[...]
        if add_bias:
            y = y + b_ref[...]
        if relu:
            y = jnp.maximum(y, 0.0)
        o_ref[...] = y.astype(o_ref.dtype)


def _rowmm(x_p, w_p, b_p, *, add_bias, relu, out_dtype, tm, vmem_cap):
    """Row-tiled (tm rows at a time) x @ W [+ b] [relu]."""
    n_pad, f_in_p = x_p.shape
    f_out_p = w_p.shape[1]
    out_isz = jnp.dtype(out_dtype).itemsize
    # TODO(synk): K-tile the feature matmul if W itself ever exceeds VMEM.
    need = (2 * tm * f_in_p * x_p.dtype.itemsize
            + 2 * int(w_p.size) * w_p.dtype.itemsize
            + int(b_p.size) * 4 + 2 * tm * f_out_p * out_isz)
    flops = 2 * n_pad * f_in_p * f_out_p
    bytes_accessed = int(x_p.size * x_p.dtype.itemsize
                         + w_p.size * w_p.dtype.itemsize
                         + b_p.size * 4 + n_pad * f_out_p * out_isz)
    return pl.pallas_call(
        functools.partial(_rowmm_kernel, add_bias=add_bias, relu=relu),
        out_shape=jax.ShapeDtypeStruct((n_pad, f_out_p), out_dtype),
        grid=(n_pad // tm,),
        in_specs=[pl.BlockSpec((tm, f_in_p), lambda i: (i, 0)),
                  _full_spec(w_p.shape),
                  _full_spec(b_p.shape)],
        out_specs=pl.BlockSpec((tm, f_out_p), lambda i: (i, 0)),
        compiler_params=pltpu.CompilerParams(
            dimension_semantics=("parallel",),
            vmem_limit_bytes=_vmem_limit(vmem_cap, need)),
        cost_estimate=pl.CostEstimate(flops=flops, transcendentals=0,
                                      bytes_accessed=bytes_accessed),
    )(x_p, w_p, b_p)


def _adjmm(adj_p, m_p, b_p, *, add_bias, relu, out_dtype, tm, tk, vmem_cap):
    """Streamed adj @ M [+ b] [relu]; adj is tiled (tm, tk), K accumulated."""
    n_pad = adj_p.shape[0]
    f_p = m_p.shape[1]
    out_isz = jnp.dtype(out_dtype).itemsize
    need = (2 * tm * tk * adj_p.dtype.itemsize
            + 2 * tk * f_p * m_p.dtype.itemsize
            + int(b_p.size) * 4 + 2 * tm * f_p * out_isz + tm * f_p * 4)
    flops = 2 * n_pad * n_pad * f_p
    bytes_accessed = int(adj_p.size * adj_p.dtype.itemsize
                         + m_p.size * m_p.dtype.itemsize
                         + b_p.size * 4 + n_pad * f_p * out_isz)
    return pl.pallas_call(
        functools.partial(_adjmm_kernel, add_bias=add_bias, relu=relu),
        out_shape=jax.ShapeDtypeStruct((n_pad, f_p), out_dtype),
        grid=(n_pad // tm, n_pad // tk),
        in_specs=[pl.BlockSpec((tm, tk), lambda i, k: (i, k)),
                  pl.BlockSpec((tk, f_p), lambda i, k: (k, 0)),
                  pl.BlockSpec((1, f_p), lambda i, k: (0, 0))],
        out_specs=pl.BlockSpec((tm, f_p), lambda i, k: (i, 0)),
        scratch_shapes=[pltpu.VMEM((tm, f_p), jnp.float32)],
        compiler_params=pltpu.CompilerParams(
            dimension_semantics=("parallel", "arbitrary"),
            vmem_limit_bytes=_vmem_limit(vmem_cap, need)),
        cost_estimate=pl.CostEstimate(flops=flops, transcendentals=0,
                                      bytes_accessed=bytes_accessed),
    )(adj_p, m_p, b_p)


# ----------------------------------------------------------------------------
# Public entry point.
# ----------------------------------------------------------------------------
def gcn_inference(x, adj, weights, *, matmul_dtype=jnp.float32,
                  force_tiled=False):
    """weights: list of (W, b); ReLU on every layer except the last."""
    n = adj.shape[0]
    assert adj.shape == (n, n)
    assert x.shape[0] == n
    n_layers = len(weights)
    assert n_layers >= 1

    feat = [x.shape[1]] + [w.shape[1] for (w, _) in weights]
    for i, (w, b) in enumerate(weights):
        assert w.shape[0] == feat[i]
        assert b.shape == (w.shape[1],)

    matmul_dtype = jnp.dtype(matmul_dtype)
    mm_isz = matmul_dtype.itemsize

    # N padded to the MXU tile (also covers bf16 sublane 16); features to 128.
    n_pad = _round_up(n, _LANE)
    feat_pad = [_round_up(f, _LANE) for f in feat]
    max_f_pad = max(feat_pad)

    # Host-side cast of the large operands to the MXU dtype (halves adj DMA
    # bytes for bf16); biases stay f32 for the epilogue.
    adj_p = _pad2d(adj, n_pad, n_pad, matmul_dtype)
    x_p = _pad2d(x, n_pad, feat_pad[0], matmul_dtype)
    w_ps, b_ps = [], []
    for i, (w, b) in enumerate(weights):
        w_ps.append(_pad2d(w, feat_pad[i], feat_pad[i + 1], matmul_dtype))
        b_ps.append(_pad2d(b.reshape(1, -1), 1, feat_pad[i + 1], jnp.float32))

    vmem_cap = _vmem_capacity_bytes()

    # Fused-path VMEM footprint (operands + output + activation scratch +
    # allowance for matmul temporaries).
    inter_f = feat_pad[1:-1]
    h_cols = max(inter_f) if inter_f else _LANE
    fused_bytes = (int(adj_p.size) + int(x_p.size)) * mm_isz
    fused_bytes += sum(int(wp.size) * mm_isz for wp in w_ps)
    fused_bytes += sum(int(bp.size) * 4 for bp in b_ps)
    fused_bytes += n_pad * feat_pad[-1] * 4          # output (f32)
    fused_bytes += n_pad * h_cols * mm_isz           # activation scratch
    fused_bytes += 3 * n_pad * max_f_pad * 4         # temporaries headroom

    if not force_tiled and fused_bytes <= int(0.75 * vmem_cap):
        # ---------------- fused single-kernel path ----------------
        layer_dims = tuple((feat_pad[i], feat_pad[i + 1])
                           for i in range(n_layers))
        relu_flags = tuple(i < n_layers - 1 for i in range(n_layers))
        operands = [adj_p, x_p]
        for wp, bp in zip(w_ps, b_ps):
            operands += [wp, bp]

        flops = 0
        for i in range(n_layers):
            f_small = min(feat_pad[i], feat_pad[i + 1])
            flops += 2 * n_pad * n_pad * f_small
            flops += 2 * n_pad * feat_pad[i] * feat_pad[i + 1]
        bytes_accessed = int(
            sum(int(op.size) * op.dtype.itemsize for op in operands)
            + n_pad * feat_pad[-1] * 4)

        out_pad = pl.pallas_call(
            functools.partial(_fused_gcn_kernel, layer_dims=layer_dims,
                              relu_flags=relu_flags,
                              matmul_dtype=matmul_dtype),
            out_shape=jax.ShapeDtypeStruct((n_pad, feat_pad[-1]), jnp.float32),
            in_specs=[_full_spec(op.shape) for op in operands],
            out_specs=_full_spec((n_pad, feat_pad[-1])),
            scratch_shapes=[pltpu.VMEM((n_pad, h_cols), matmul_dtype)],
            compiler_params=pltpu.CompilerParams(
                vmem_limit_bytes=_vmem_limit(vmem_cap, fused_bytes)),
            cost_estimate=pl.CostEstimate(flops=flops, transcendentals=0,
                                          bytes_accessed=bytes_accessed),
        )(*operands)
        return out_pad[:n, :feat[-1]]

    # ---------------- streamed / tiled fallback path ----------------
    tm = 256 if n_pad % 256 == 0 else 128
    tk = tm
    h = x_p
    for i in range(n_layers):
        relu = i < n_layers - 1
        out_dtype = jnp.float32 if i == n_layers - 1 else matmul_dtype
        f_in_p, f_out_p = feat_pad[i], feat_pad[i + 1]
        if f_out_p <= f_in_p:
            # adj @ (h @ W): run the N^2 matmul at the narrower width.
            hw = _rowmm(h, w_ps[i], b_ps[i], add_bias=False, relu=False,
                        out_dtype=matmul_dtype, tm=tm, vmem_cap=vmem_cap)
            h = _adjmm(adj_p, hw, b_ps[i], add_bias=True, relu=relu,
                       out_dtype=out_dtype, tm=tm, tk=tk, vmem_cap=vmem_cap)
        else:
            # (adj @ h) @ W.
            ah = _adjmm(adj_p, h, b_ps[i], add_bias=False, relu=False,
                        out_dtype=matmul_dtype, tm=tm, tk=tk,
                        vmem_cap=vmem_cap)
            h = _rowmm(ah, w_ps[i], b_ps[i], add_bias=True, relu=relu,
                       out_dtype=out_dtype, tm=tm, vmem_cap=vmem_cap)
    return h[:n, :feat[-1]]


def _reference(x, adj, weights):
    n_layers = len(weights)
    for i, (w, b) in enumerate(weights):
        x = adj @ x @ w + b
        if i < n_layers - 1:
            x = jnp.maximum(x, 0.0)
    return x


if __name__ == "__main__":
    key = jax.random.PRNGKey(0)
    ks = jax.random.split(key, 12)

    # ---- Case 1: small GCN (fused single-kernel path), N=8, 16 -> 160 -> 8.
    N, F_IN, F_HID, F_OUT = 8, 16, 160, 8
    adj = jax.random.uniform(ks[0], (N, N), dtype=jnp.float32)
    adj = 0.5 * (adj + adj.T) + jnp.eye(N, dtype=jnp.float32)
    adj = adj / jnp.sum(adj, axis=1, keepdims=True)
    x = jax.random.normal(ks[1], (N, F_IN), dtype=jnp.float32)
    weights = [
        (0.1 * jax.random.normal(ks[2], (F_IN, F_HID), jnp.float32),
         0.1 * jax.random.normal(ks[3], (F_HID,), jnp.float32)),
        (0.1 * jax.random.normal(ks[4], (F_HID, F_OUT), jnp.float32),
         0.1 * jax.random.normal(ks[5], (F_OUT,), jnp.float32)),
    ]
    ref = _reference(x, adj, weights)

    out = jax.block_until_ready(gcn_inference(x, adj, weights))
    assert out.shape == (N, F_OUT)
    assert jnp.allclose(out, ref, atol=1e-4, rtol=1e-4)

    out_bf16 = jax.block_until_ready(
        gcn_inference(x, adj, weights, matmul_dtype=jnp.bfloat16))
    assert out_bf16.shape == (N, F_OUT)
    assert jnp.allclose(out_bf16, ref, atol=5e-2, rtol=5e-2)

    # ---- Case 2: larger graph, force the streamed/tiled path (multi-tile
    # grid over rows and the K axis), N=300, 64 -> 160 -> 32.
    N2, G_IN, G_HID, G_OUT = 300, 64, 160, 32
    adj2 = jax.random.uniform(ks[6], (N2, N2), dtype=jnp.float32)
    adj2 = 0.5 * (adj2 + adj2.T) + jnp.eye(N2, dtype=jnp.float32)
    adj2 = adj2 / jnp.sum(adj2, axis=1, keepdims=True)
    x2 = jax.random.normal(ks[7], (N2, G_IN), dtype=jnp.float32)
    weights2 = [
        (0.1 * jax.random.normal(ks[8], (G_IN, G_HID), jnp.float32),
         0.1 * jax.random.normal(ks[9], (G_HID,), jnp.float32)),
        (0.1 * jax.random.normal(ks[10], (G_HID, G_OUT), jnp.float32),
         0.1 * jax.random.normal(ks[11], (G_OUT,), jnp.float32)),
    ]
    ref2 = _reference(x2, adj2, weights2)
    out2 = jax.block_until_ready(
        gcn_inference(x2, adj2, weights2, force_tiled=True))
    assert out2.shape == (N2, G_OUT)
    assert jnp.allclose(out2, ref2, atol=1e-3, rtol=1e-3)

    print("KERNEL_OK")
</pallas_src>

<mosaic_0001>
module attributes {stable_mosaic.version = 11 : i64} {
  func.func @_fused_gcn_kernel(%arg0: memref<128x128xf32, #tpu.memory_space<vmem>>, %arg1: memref<128x128xf32, #tpu.memory_space<vmem>>, %arg2: memref<128x256xf32, #tpu.memory_space<vmem>>, %arg3: memref<1x256xf32, #tpu.memory_space<vmem>>, %arg4: memref<256x128xf32, #tpu.memory_space<vmem>>, %arg5: memref<1x128xf32, #tpu.memory_space<vmem>>, %arg6: memref<128x128xf32, #tpu.memory_space<vmem>>, %arg7: memref<128x256xf32, #tpu.memory_space<vmem>>) attributes {dimension_semantics = [], scalar_prefetch = 0 : i64, scratch_operands = 1 : i64, tpu.core_type = #tpu.core_type<tc>} {
    %c0 = arith.constant 0 : index
    %c0_0 = arith.constant 0 : index
    %0 = vector.load %arg0[%c0, %c0_0] : memref<128x128xf32, #tpu.memory_space<vmem>>, vector<128x128xf32>
    %c0_1 = arith.constant 0 : index
    %c0_2 = arith.constant 0 : index
    %1 = vector.load %arg2[%c0_1, %c0_2] : memref<128x256xf32, #tpu.memory_space<vmem>>, vector<128x256xf32>
    %c0_3 = arith.constant 0 : index
    %c0_4 = arith.constant 0 : index
    %2 = vector.load %arg3[%c0_3, %c0_4] : memref<1x256xf32, #tpu.memory_space<vmem>>, vector<1x256xf32>
    %c0_5 = arith.constant 0 : index
    %c0_6 = arith.constant 0 : index
    %3 = vector.load %arg1[%c0_5, %c0_6] : memref<128x128xf32, #tpu.memory_space<vmem>>, vector<128x128xf32>
    %cst = arith.constant dense<0.000000e+00> : vector<128x128xf32>
    %4 = tpu.matmul %0, %3, %cst {dimension_numbers = #tpu.dot_dimension_numbers<[1], [0], [0], [1], [0, 0, 1, 1], [], []>} : vector<128x128xf32>, vector<128x128xf32>, vector<128x128xf32> -> vector<128x128xf32>
    %cst_7 = arith.constant dense<0.000000e+00> : vector<128x256xf32>
    %5 = tpu.matmul %4, %1, %cst_7 {dimension_numbers = #tpu.dot_dimension_numbers<[1], [0], [0], [1], [0, 0, 1, 1], [], []>} : vector<128x128xf32>, vector<128x256xf32>, vector<128x256xf32> -> vector<128x256xf32>
    %6 = vector.broadcast %2 : vector<1x256xf32> to vector<128x256xf32>
    %7 = arith.addf %5, %6 : vector<128x256xf32>
    %cst_8 = arith.constant 0.000000e+00 : f32
    %8 = vector.broadcast %cst_8 : f32 to vector<128x256xf32>
    %9 = arith.maximumf %7, %8 : vector<128x256xf32>
    %c0_9 = arith.constant 0 : index
    %c0_10 = arith.constant 0 : index
    %10 = vector.load %arg7[%c0_9, %c0_10] : memref<128x256xf32, #tpu.memory_space<vmem>>, vector<128x256xf32>
    tpu.vector_store %arg7[%c0_9, %c0_10], %9 {strides = array<i32>} : memref<128x256xf32, #tpu.memory_space<vmem>>, vector<128x256xf32>,
    %c0_11 = arith.constant 0 : index
    %c0_12 = arith.constant 0 : index
    %11 = vector.load %arg4[%c0_11, %c0_12] : memref<256x128xf32, #tpu.memory_space<vmem>>, vector<256x128xf32>
    %c0_13 = arith.constant 0 : index
    %c0_14 = arith.constant 0 : index
    %12 = vector.load %arg5[%c0_13, %c0_14] : memref<1x128xf32, #tpu.memory_space<vmem>>, vector<1x128xf32>
    %c0_15 = arith.constant 0 : index
    %c0_16 = arith.constant 0 : index
    %13 = vector.load %arg7[%c0_15, %c0_16] : memref<128x256xf32, #tpu.memory_space<vmem>>, vector<128x256xf32>
    %cst_17 = arith.constant dense<0.000000e+00> : vector<128x128xf32>
    %14 = tpu.matmul %13, %11, %cst_17 {dimension_numbers = #tpu.dot_dimension_numbers<[1], [0], [0], [1], [0, 0, 1, 1], [], []>} : vector<128x256xf32>, vector<256x128xf32>, vector<128x128xf32> -> vector<128x128xf32>
    %cst_18 = arith.constant dense<0.000000e+00> : vector<128x128xf32>
    %15 = tpu.matmul %0, %14, %cst_18 {dimension_numbers = #tpu.dot_dimension_numbers<[1], [0], [0], [1], [0, 0, 1, 1], [], []>} : vector<128x128xf32>, vector<128x128xf32>, vector<128x128xf32> -> vector<128x128xf32>
    %16 = vector.broadcast %12 : vector<1x128xf32> to vector<128x128xf32>
    %17 = arith.addf %15, %16 : vector<128x128xf32>
    %c0_19 = arith.constant 0 : index
    %c0_20 = arith.constant 0 : index
    %18 = vector.load %arg6[%c0_19, %c0_20] : memref<128x128xf32, #tpu.memory_space<vmem>>, vector<128x128xf32>
    tpu.vector_store %arg6[%c0_19, %c0_20], %17 {strides = array<i32>} : memref<128x128xf32, #tpu.memory_space<vmem>>, vector<128x128xf32>,
    return
  }
}

</mosaic_0001>

<bundles_post_ra>
// kernel: tpu_custom_call.1
= control target key start
LH: loop header
LB: loop body
LE: loop exit
PB: predicated region body
PF: predicated region fallthrough
CT: control target
= control target key end

     0   :  { %11 = vsyncpa [#allocation4], 0  ;;  %s1502_s0 = inlined_call_operand.hbm [shape: f32[128,128], index: 0, kind: input, shape index: {}]   ;;  %s1503_s1 = inlined_call_operand.hbm [shape: f32[128,128], index: 1, kind: input, shape index: {}]   ;;  %s1504_s2 = inlined_call_operand.hbm [shape: f32[128,256], index: 2, kind: input, shape index: {}]   ;;  %s1505_s3 = inlined_call_operand.vmem [shape: f32[1,256], index: 3, kind: input, shape index: {}]   ;;  %s1506_s4 = inlined_call_operand.hbm [shape: f32[256,128], index: 4, kind: input, shape index: {}]   ;;  %s1507_s5 = inlined_call_operand.vmem [shape: f32[1,128], index: 5, kind: input, shape index: {}]   ;;  %s1508_s6 = inlined_call_operand.hbm [shape: f32[128,128], index: 6, kind: output, shape index: {}]  }
   0x1   :  { %12 = vsyncpa [#allocation7], 0 }
   0x2   :  { %13 = vsyncpa [#allocation10], 0 }
   0x3   :  { %14 = vsyncpa [#allocation5], 0  ;;  %s1296_s21 = smov [#allocation6]   ;;  %s1297_s23 = smov [#allocation3]  }
   0x4   :  { %s32_s22 = sshll.u32 %s1296_s21, 4  ;;  %s20_s24 = sshll.u32 %s1297_s23, 4  ;;  %s33_s22 = int_to_ptr.vmem [resolvable:$true] %s32_s22  ;;  %s21_s24 = int_to_ptr.vmem [resolvable:$true] %s20_s24 }
   0x5   :  { %s1196_s25 = scalar_lea.vmem %s33_s22, 2048  ;;  %p1201_p1 = scmp.lt.s32.totalorder %s33_s22, %s33_s22 }
   0x6   :  { %p1197_p0 = scmp.ne.s32.totalorder %s33_s22, %s1196_s25  ;;  %p1202_p2 = scmp.lt.s32.totalorder %s1196_s25, %s1196_s25 }
   0x8   :  { %p1203_p3 = por %p1202_p2, %p1201_p1 }
   0xa   :  { %p1204_p4 = pnand %p1203_p3, %p1197_p0 }
   0xc   :  { %1207 = shalt.err (!%p1204_p4)
}
   0xd   :  { %s1298_s26 = smov 128   ;;  %s1299_s27 = smov 8  }
   0xe   :  { %38 = dma.hbm_to_vmem [thread:$0]  %s1503_s1, 2048, %s33_s22, [#allocation7], %s1298_s26, %s1298_s26, %s1299_s27  }
   0xf   :  { %s1216_s30 = scalar_lea.vmem %s21_s24, 2048  ;;  %p1221_p6 = scmp.lt.s32.totalorder %s21_s24, %s21_s24 }
  0x10   :  { %p1217_p5 = scmp.ne.s32.totalorder %s21_s24, %s1216_s30  ;;  %p1222_p7 = scmp.lt.s32.totalorder %s1216_s30, %s1216_s30 }
  0x12   :  { %p1223_p8 = por %p1222_p7, %p1221_p6 }
  0x14   :  { %p1224_p9 = pnand %p1223_p8, %p1217_p5 }
  0x16   :  { %1227 = shalt.err (!%p1224_p9)
}
  0x17   :  { %26 = dma.hbm_to_vmem [thread:$0]  %s1502_s0, 2048, %s21_s24, [#allocation4], %s1298_s26, %s1298_s26, %s1299_s27  }
  0x18   :  { %s1300_s9 = smov [#allocation8]  }
  0x19   :  { %s44_s10 = sshll.u32 %s1300_s9, 4  ;;  %s45_s10 = int_to_ptr.vmem [resolvable:$true] %s44_s10 }
  0x1a   :  { %s1236_s11 = scalar_lea.vmem %s45_s10, 4096  ;;  %p1241_p11 = scmp.lt.s32.totalorder %s45_s10, %s45_s10 }
  0x1b   :  { %p1237_p10 = scmp.ne.s32.totalorder %s45_s10, %s1236_s11  ;;  %p1242_p12 = scmp.lt.s32.totalorder %s1236_s11, %s1236_s11 }
  0x1d   :  { %p1243_p13 = por %p1242_p12, %p1241_p11 }
  0x1f   :  { %p1244_p0 = pnand %p1243_p13, %p1237_p10 }
  0x21   :  { %1247 = shalt.err (!%p1244_p0)
}
  0x22   :  { %s1301_s1 = smov 256   ;;  %s1302_s12 = smov 16  }
  0x23   :  { %50 = dma.hbm_to_vmem [thread:$0]  %s1504_s2, 4096, %s45_s10, [#allocation7], %s1301_s1, %s1301_s1, %s1302_s12  }
  0x24   :  { %s1303_s15 = smov [#allocation9]  }
  0x25   :  { %s58_s16 = sshll.u32 %s1303_s15, 4  ;;  %s59_s16 = int_to_ptr.vmem [resolvable:$true] %s58_s16 }
  0x26   :  { %s1256_s0 = scalar_lea.vmem %s59_s16, 4096  ;;  %p1261_p2 = scmp.lt.s32.totalorder %s59_s16, %s59_s16 }
  0x27   :  { %p1257_p1 = scmp.ne.s32.totalorder %s59_s16, %s1256_s0  ;;  %p1262_p3 = scmp.lt.s32.totalorder %s1256_s0, %s1256_s0 }
  0x29   :  { %p1263_p4 = por %p1262_p3, %p1261_p2 }
  0x2b   :  { %p1264_p5 = pnand %p1263_p4, %p1257_p1 }
  0x2d   :  { %1267 = shalt.err (!%p1264_p5)
}
  0x2e   :  { %64 = dma.hbm_to_vmem [thread:$0]  %s1506_s4, 4096, %s59_s16, [#allocation10], %s1298_s26, %s1298_s26, %s1299_s27  }
  0x2f   :  { %1288 = dma.done.wait [#allocation4], 2048  }
  0x30   :  { %1289 = vsyncadd [#allocation4], 4294965248 }
  0x31   :  { %1290 = dma.done.wait [#allocation7], 6144  }
  0x32   :  { %1291 = vsyncadd [#allocation7], 4294961152 }
  0x33   :  { %1292 = dma.done.wait [#allocation10], 4096  }
  0x34   :  { %1293 = vsyncadd [#allocation10], 4294963200  ;;  %v143_v0 = vld [vmem:[#allocation6 + $0x78] sm:$0xff]  ;;  %v142_v1 = vld [vmem:[#allocation6 + $0x70] sm:$0xff] }
  0x35   :  { %1066 = vmatprep.subr.mxu0 %v143_v0  ;;  %v141_v2 = vld [vmem:[#allocation6 + $0x68] sm:$0xff]  ;;  %v140_v3 = vld [vmem:[#allocation6 + $0x60] sm:$0xff]  ;;  %v139_v5 = vld [vmem:[#allocation6 + $0x58] sm:$0xff] }
  0x36   :  { %1067 = vmatpush3.msra.mxu0 %v143_v0  ;;  %v1362_v4 = vld [vmem:[#allocation3] sm:$0xff]  ;;  %v138_v6 = vld [vmem:[#allocation6 + $0x50] sm:$0xff]  ;;  %v137_v7 = vld [vmem:[#allocation6 + $0x48] sm:$0xff]  ;;  %v1304_v0 = vmov 0.0  }
  0x37   :  { %1068 = vmatprep.subr.mxu0 %v142_v1  ;;  %1098 = vmatprep.mubr.f32.mxu0 %v1362_v4  ;;  %v126_v8 = vld [vmem:[#allocation8 + $0xf8] sm:$0xff]  ;;  %v125_v9 = vld [vmem:[#allocation8 + $0xf0] sm:$0xff]  ;;  %v124_v10 = vld [vmem:[#allocation8 + $0xe8] sm:$0xff] }
  0x38   :  { %1069 = vmatpush3.msra.mxu0 %v142_v1  ;;  %300 = vmatprep.subr.mxu1 %v126_v8  ;;  %v123_v11 = vld [vmem:[#allocation8 + $0xe0] sm:$0xff]  ;;  %v122_v13 = vld [vmem:[#allocation8 + $0xd8] sm:$0xff]  ;;  %v121_v14 = vld [vmem:[#allocation8 + $0xd0] sm:$0xff] }
  0x39   :  { %1070 = vmatprep.subr.mxu0 %v141_v2  ;;  %v136_v12 = vld [vmem:[#allocation6 + $0x40] sm:$0xff]  ;;  %301 = vmatpush1.msra.mxu1 %v125_v9  ;;  %v135_v15 = vld [vmem:[#allocation6 + $0x38] sm:$0xff]  ;;  %v120_v16 = vld [vmem:[#allocation8 + $0xc8] sm:$0xff] }
  0x3a   :  { %1071 = vmatpush3.msra.mxu0 %v141_v2  ;;  %302 = vmatprep.subr.mxu1 %v124_v10  ;;  %v119_v17 = vld [vmem:[#allocation8 + $0xc0] sm:$0xff]  ;;  %v134_v18 = vld [vmem:[#allocation6 + $0x30] sm:$0xff]  ;;  %v118_v19 = vld [vmem:[#allocation8 + $0xb8] sm:$0xff] }
  0x3b   :  { %1072 = vmatprep.subr.mxu0 %v140_v3  ;;  %303 = vmatpush1.msra.mxu1 %v123_v11  ;;  %v117_v20 = vld [vmem:[#allocation8 + $0xb0] sm:$0xff]  ;;  %v133_v21 = vld [vmem:[#allocation6 + $0x28] sm:$0xff]  ;;  %v115_v23 = vld [vmem:[#allocation8 + $0xa0] sm:$0xff] }
  0x3c   :  { %1073 = vmatpush3.msra.mxu0 %v140_v3  ;;  %304 = vmatprep.subr.mxu1 %v122_v13  ;;  %v116_v22 = vld [vmem:[#allocation8 + $0xa8] sm:$0xff]  ;;  %v132_v24 = vld [vmem:[#allocation6 + $0x20] sm:$0xff]  ;;  %v114_v25 = vld [vmem:[#allocation8 + $0x98] sm:$0xff] }
  0x3d   :  { %1074 = vmatprep.subr.mxu0 %v139_v5  ;;  %305 = vmatpush1.msra.mxu1 %v121_v14  ;;  %v113_v26 = vld [vmem:[#allocation8 + $0x90] sm:$0xff]  ;;  %v131_v27 = vld [vmem:[#allocation6 + $0x18] sm:$0xff]  ;;  %v112_v28 = vld [vmem:[#allocation8 + $0x88] sm:$0xff] }
  0x3e   :  { %1075 = vmatpush3.msra.mxu0 %v139_v5  ;;  %306 = vmatprep.subr.mxu1 %v120_v16  ;;  %v111_v29 = vld [vmem:[#allocation8 + $0x80] sm:$0xff]  ;;  %v130_v30 = vld [vmem:[#allocation6 + $0x10] sm:$0xff]  ;;  %v110_v31 = vld [vmem:[#allocation8 + $0x78] sm:$0xff] }
  0x3f   :  { %1076 = vmatprep.subr.mxu0 %v138_v6  ;;  %307 = vmatpush1.msra.mxu1 %v119_v17  ;;  %v109_v32 = vld [vmem:[#allocation8 + $0x70] sm:$0xff]  ;;  %v129_v33 = vld [vmem:[#allocation6 + $0x8] sm:$0xff]  ;;  %v107_v35 = vld [vmem:[#allocation8 + $0x60] sm:$0xff] }
  0x40   :  { %1077 = vmatpush3.msra.mxu0 %v138_v6  ;;  %308 = vmatprep.subr.mxu1 %v118_v19  ;;  %v108_v34 = vld [vmem:[#allocation8 + $0x68] sm:$0xff]  ;;  %v128_v36 = vld [vmem:[#allocation6] sm:$0xff]  ;;  %v106_v37 = vld [vmem:[#allocation8 + $0x58] sm:$0xff] }
  0x41   :  { %1078 = vmatprep.subr.mxu0 %v137_v7  ;;  %309 = vmatpush1.msra.mxu1 %v117_v20  ;;  %v105_v38 = vld [vmem:[#allocation8 + $0x50] sm:$0xff]  ;;  %v1365_v39 = vld [vmem:[#allocation3 + $0x8] sm:$0xff]  ;;  %v103_v42 = vld [vmem:[#allocation8 + $0x40] sm:$0xff] }
  0x42   :  { %1079 = vmatpush3.msra.mxu0 %v137_v7  ;;  %310 = vmatprep.subr.mxu1 %v116_v22  ;;  %v104_v40 = vld [vmem:[#allocation8 + $0x48] sm:$0xff]  ;;  %v1367_v41 = vld [vmem:[#allocation3 + $0x10] sm:$0xff]  ;;  %v102_v43 = vld [vmem:[#allocation8 + $0x38] sm:$0xff] }
  0x43   :  { %1080 = vmatprep.subr.mxu0 %v136_v12  ;;  %311 = vmatpush1.msra.mxu1 %v115_v23  ;;  %v101_v44 = vld [vmem:[#allocation8 + $0x30] sm:$0xff]  ;;  %v1371_v45 = vld [vmem:[#allocation3 + $0x18] sm:$0xff]  ;;  %v100_v46 = vld [vmem:[#allocation8 + $0x28] sm:$0xff] }
  0x44   :  { %1081 = vmatpush3.msra.mxu0 %v136_v12  ;;  %312 = vmatprep.subr.mxu1 %v114_v25  ;;  %v1373_v47 = vld [vmem:[#allocation3 + $0x20] sm:$0xff]  ;;  %v98_v49 = vld [vmem:[#allocation8 + $0x18] sm:$0xff]  ;;  %v1377_v50 = vld [vmem:[#allocation3 + $0x28] sm:$0xff] }
  0x45   :  { %1082 = vmatprep.subr.mxu0 %v135_v15  ;;  %313 = vmatpush1.msra.mxu1 %v113_v26  ;;  %v99_v48 = vld [vmem:[#allocation8 + $0x20] sm:$0xff]  ;;  %v1379_v51 = vld [vmem:[#allocation3 + $0x30] sm:$0xff]  ;;  %v1383_v52 = vld [vmem:[#allocation3 + $0x38] sm:$0xff] }
  0x46   :  { %1083 = vmatpush3.msra.mxu0 %v135_v15  ;;  %314 = vmatprep.subr.mxu1 %v112_v28  ;;  %v1385_v53 = vld [vmem:[#allocation3 + $0x40] sm:$0xff]  ;;  %v1389_v54 = vld [vmem:[#allocation3 + $0x48] sm:$0xff]  ;;  %v1391_v55 = vld [vmem:[#allocation3 + $0x50] sm:$0xff] }
  0x47   :  { %1084 = vmatprep.subr.mxu0 %v134_v18  ;;  %315 = vmatpush1.msra.mxu1 %v111_v29  ;;  %v1395_v56 = vld [vmem:[#allocation3 + $0x58] sm:$0xff]  ;;  %v1397_v57 = vld [vmem:[#allocation3 + $0x60] sm:$0xff]  ;;  %v1401_v58 = vld [vmem:[#allocation3 + $0x68] sm:$0xff] }
  0x48   :  { %1085 = vmatpush3.msra.mxu0 %v134_v18  ;;  %316 = vmatprep.subr.mxu1 %v110_v31  ;;  %v1403_v59 = vld [vmem:[#allocation3 + $0x70] sm:$0xff]  ;;  %v1407_v60 = vld [vmem:[#allocation3 + $0x78] sm:$0xff]  ;;  %v96_v62 = vld [vmem:[#allocation8 + $0x8] sm:$0xff] }
  0x49   :  { %1086 = vmatprep.subr.mxu0 %v133_v21  ;;  %317 = vmatpush1.msra.mxu1 %v109_v32  ;;  %v97_v61 = vld [vmem:[#allocation8 + $0x10] sm:$0xff]  ;;  %v95_v63 = vld [vmem:[#allocation8] sm:$0xff]  ;;  %v556_v1 = vld [vmem:[#allocation9 + $0xf8] sm:$0xff] }
  0x4a   :  { %1087 = vmatpush3.msra.mxu0 %v133_v21  ;;  %318 = vmatprep.subr.mxu1 %v108_v34  ;;  %v540_v2 = vld [vmem:[#allocation9 + $0x78] sm:$0xff]  ;;  %v555_v3 = vld [vmem:[#allocation9 + $0xf0] sm:$0xff]  ;;  %v554_v6 = vld [vmem:[#allocation9 + $0xe8] sm:$0xff] }
  0x4b   :  { %1088 = vmatprep.subr.mxu0 %v132_v24  ;;  %319 = vmatpush1.msra.mxu1 %v107_v35  ;;  %v539_v5 = vld [vmem:[#allocation9 + $0x70] sm:$0xff]  ;;  %v538_v7 = vld [vmem:[#allocation9 + $0x68] sm:$0xff]  ;;  %v553_v8 = vld [vmem:[#allocation9 + $0xe0] sm:$0xff] }
  0x4c   :  { %1089 = vmatpush3.msra.mxu0 %v132_v24  ;;  %320 = vmatprep.subr.mxu1 %v106_v37  ;;  %v537_v9 = vld [vmem:[#allocation9 + $0x60] sm:$0xff]  ;;  %v552_v10 = vld [vmem:[#allocation9 + $0xd8] sm:$0xff]  ;;  %v551_v12 = vld [vmem:[#allocation9 + $0xd0] sm:$0xff] }
  0x4d   :  { %1090 = vmatprep.subr.mxu0 %v131_v27  ;;  %321 = vmatpush1.msra.mxu1 %v105_v38  ;;  %v536_v11 = vld [vmem:[#allocation9 + $0x58] sm:$0xff]  ;;  %v535_v13 = vld [vmem:[#allocation9 + $0x50] sm:$0xff]  ;;  %v550_v14 = vld [vmem:[#allocation9 + $0xc8] sm:$0xff] }
  0x4e   :  { %1091 = vmatpush3.msra.mxu0 %v131_v27  ;;  %322 = vmatprep.subr.mxu1 %v104_v40  ;;  %v534_v15 = vld [vmem:[#allocation9 + $0x48] sm:$0xff]  ;;  %v549_v16 = vld [vmem:[#allocation9 + $0xc0] sm:$0xff]  ;;  %v548_v18 = vld [vmem:[#allocation9 + $0xb8] sm:$0xff] }
  0x4f   :  { %1092 = vmatprep.subr.mxu0 %v130_v30  ;;  %323 = vmatpush1.msra.mxu1 %v103_v42  ;;  %v533_v17 = vld [vmem:[#allocation9 + $0x40] sm:$0xff]  ;;  %v532_v19 = vld [vmem:[#allocation9 + $0x38] sm:$0xff]  ;;  %v547_v20 = vld [vmem:[#allocation9 + $0xb0] sm:$0xff] }
  0x50   :  { %1093 = vmatpush3.msra.mxu0 %v130_v30  ;;  %324 = vmatprep.subr.mxu1 %v102_v43  ;;  %v531_v21 = vld [vmem:[#allocation9 + $0x30] sm:$0xff]  ;;  %v546_v22 = vld [vmem:[#allocation9 + $0xa8] sm:$0xff]  ;;  %v545_v24 = vld [vmem:[#allocation9 + $0xa0] sm:$0xff] }
  0x51   :  { %1094 = vmatprep.subr.mxu0 %v129_v33  ;;  %325 = vmatpush1.msra.mxu1 %v101_v44  ;;  %v530_v23 = vld [vmem:[#allocation9 + $0x28] sm:$0xff]  ;;  %v529_v25 = vld [vmem:[#allocation9 + $0x20] sm:$0xff]  ;;  %v544_v44 = vld [vmem:[#allocation9 + $0x98] sm:$0xff] }
  0x52   :  { %1095 = vmatpush3.msra.mxu0 %v129_v33  ;;  %326 = vmatprep.subr.mxu1 %v100_v46  ;;  %v528_v46 = vld [vmem:[#allocation9 + $0x18] sm:$0xff] }
  0x53   :  { %1096 = vmatprep.subr.mxu0 %v128_v36  ;;  %327 = vmatpush1.msra.mxu1 %v99_v48  ;;  %v543_v48 = vld [vmem:[#allocation9 + $0x90] sm:$0xff] }
  0x54   :  { %1097 = vmatpush3.msra.mxu0 %v128_v36  ;;  %328 = vmatprep.subr.mxu1 %v98_v49  ;;  %v527_v49 = vld [vmem:[#allocation9 + $0x10] sm:$0xff] }
  0x55   :  { %1099 = vmatmul.mubr.f32.vlgmr.msra.gmra.mxu0 %v1365_v39  ;;  %329 = vmatpush1.msra.mxu1 %v97_v61  ;;  %v542_v61 = vld [vmem:[#allocation9 + $0x88] sm:$0xff] }
  0x56   :  { %1101 = vmatprep.mubr.f32.mxu0 %v1367_v41  ;;  %330 = vmatprep.subr.mxu1 %v96_v62  ;;  %v526_v62 = vld [vmem:[#allocation9 + $0x8] sm:$0xff] }
  0x57   :  { %331 = vmatpush1.msra.mxu1 %v95_v63  ;;  %364 = vmatprep.mubr.f32.mxu1 %v1304_v0  ;;  %v541_v63 = vld [vmem:[#allocation9 + $0x80] sm:$0xff] }
  0x58   :  { %954 = vmatprep.subr.mxu0 %v556_v1  ;;  %v525_v1 = vld [vmem:[#allocation9] sm:$0xff] }
  0x59   :  { %1102 = vmatmul.mubr.f32.gmra.mxu0 %v1371_v45 }
  0x5a   :  { %1104 = vmatprep.mubr.f32.mxu0 %v1373_v47  ;;  %955 = vmatpush3.msra.mxu0 %v540_v2 }
  0x5b   :  { %956 = vmatprep.subr.mxu0 %v555_v3 }
  0x5c   :  { %957 = vmatpush3.msra.mxu0 %v539_v5 }
  0x5d   :  { %1105 = vmatmul.mubr.f32.gmra.mxu0 %v1377_v50  ;;  %958 = vmatprep.subr.mxu0 %v554_v6 }
  0x5e   :  { %1107 = vmatprep.mubr.f32.mxu0 %v1379_v51  ;;  %959 = vmatpush3.msra.mxu0 %v538_v7 }
  0x5f   :  { %960 = vmatprep.subr.mxu0 %v553_v8 }
  0x60   :  { %961 = vmatpush3.msra.mxu0 %v537_v9 }
  0x61   :  { %1108 = vmatmul.mubr.f32.gmra.mxu0 %v1383_v52  ;;  %962 = vmatprep.subr.mxu0 %v552_v10 }
  0x62   :  { %1110 = vmatprep.mubr.f32.mxu0 %v1385_v53  ;;  %963 = vmatpush3.msra.mxu0 %v536_v11 }
  0x63   :  { %964 = vmatprep.subr.mxu0 %v551_v12 }
  0x64   :  { %965 = vmatpush3.msra.mxu0 %v535_v13 }
  0x65   :  { %1111 = vmatmul.mubr.f32.gmra.mxu0 %v1389_v54  ;;  %966 = vmatprep.subr.mxu0 %v550_v14 }
  0x66   :  { %1113 = vmatprep.mubr.f32.mxu0 %v1391_v55  ;;  %967 = vmatpush3.msra.mxu0 %v534_v15 }
  0x67   :  { %968 = vmatprep.subr.mxu0 %v549_v16 }
  0x68   :  { %969 = vmatpush3.msra.mxu0 %v533_v17 }
  0x69   :  { %1114 = vmatmul.mubr.f32.gmra.mxu0 %v1395_v56  ;;  %970 = vmatprep.subr.mxu0 %v548_v18 }
  0x6a   :  { %1116 = vmatprep.mubr.f32.mxu0 %v1397_v57  ;;  %971 = vmatpush3.msra.mxu0 %v532_v19 }
  0x6b   :  { %972 = vmatprep.subr.mxu0 %v547_v20 }
  0x6c   :  { %973 = vmatpush3.msra.mxu0 %v531_v21 }
  0x6d   :  { %1117 = vmatmul.mubr.f32.gmra.mxu0 %v1401_v58  ;;  %974 = vmatprep.subr.mxu0 %v546_v22 }
  0x6e   :  { %1119 = vmatprep.mubr.f32.mxu0 %v1403_v59  ;;  %975 = vmatpush3.msra.mxu0 %v530_v23 }
  0x6f   :  { %976 = vmatprep.subr.mxu0 %v545_v24 }
  0x70   :  { %977 = vmatpush3.msra.mxu0 %v529_v25 }
  0x71   :  { %1120 = vmatmul.mubr.f32.gmra.mxu0 %v1407_v60  ;;  %978 = vmatprep.subr.mxu0 %v544_v44 }
  0x72   :  { %979 = vmatpush3.msra.mxu0 %v528_v46 }
  0x73   :  { %980 = vmatprep.subr.mxu0 %v543_v48 }
  0x74   :  { %981 = vmatpush3.msra.mxu0 %v527_v49 }
  0x75   :  { %982 = vmatprep.subr.mxu0 %v542_v61 }
  0x76   :  { %983 = vmatpush3.msra.mxu0 %v526_v62 }
  0x77   :  { %984 = vmatprep.subr.mxu0 %v541_v63 }
  0x78   :  { %985 = vmatpush3.msra.mxu0 %v525_v1 }
 0x115   :  { %v1100_v26 = vpop.f32.mrf.mxu0 }
 0x117   :  { %v210_v27 = vpop.f32.mrf.mxu0 }
 0x118   :  { %365 = vmatmul.mubr.f32.vlgmr.msra.gmra.mxu1 %v210_v27 }
 0x119   :  { %370 = vmatprep.mubr.f32.mxu1 %v1304_v0  ;;  %v1103_v28 = vpop.f32.mrf.mxu0 }
 0x11b   :  { %v220_v29 = vpop.f32.mrf.mxu0 }
 0x11c   :  { %371 = vmatmul.mubr.f32.gmra.mxu1 %v1100_v26 }
 0x11d   :  { %376 = vmatprep.mubr.f32.mxu1 %v1304_v0  ;;  %v1106_v30 = vpop.f32.mrf.mxu0 }
 0x11f   :  { %v230_v31 = vpop.f32.mrf.mxu0 }
 0x120   :  { %377 = vmatmul.mubr.f32.gmra.mxu1 %v220_v29 }
 0x121   :  { %382 = vmatprep.mubr.f32.mxu1 %v1304_v0  ;;  %v1109_v32 = vpop.f32.mrf.mxu0 }
 0x123   :  { %v240_v33 = vpop.f32.mrf.mxu0 }
 0x124   :  { %383 = vmatmul.mubr.f32.gmra.mxu1 %v1103_v28 }
 0x125   :  { %388 = vmatprep.mubr.f32.mxu1 %v1304_v0  ;;  %v1112_v34 = vpop.f32.mrf.mxu0 }
 0x127   :  { %v250_v35 = vpop.f32.mrf.mxu0 }
 0x128   :  { %389 = vmatmul.mubr.f32.gmra.mxu1 %v230_v31 }
 0x129   :  { %394 = vmatprep.mubr.f32.mxu1 %v1304_v0  ;;  %v1115_v36 = vpop.f32.mrf.mxu0 }
 0x12b   :  { %v260_v37 = vpop.f32.mrf.mxu0 }
 0x12c   :  { %395 = vmatmul.mubr.f32.gmra.mxu1 %v1106_v30 }
 0x12d   :  { %400 = vmatprep.mubr.f32.mxu1 %v1304_v0  ;;  %v1118_v38 = vpop.f32.mrf.mxu0 }
 0x12f   :  { %v270_v40 = vpop.f32.mrf.mxu0 }
 0x130   :  { %401 = vmatmul.mubr.f32.gmra.mxu1 %v240_v33 }
 0x131   :  { %406 = vmatprep.mubr.f32.mxu1 %v1304_v0  ;;  %v1121_v42 = vpop.f32.mrf.mxu0 }
 0x133   :  { %v280_v43 = vpop.f32.mrf.mxu0 }
 0x134   :  { %407 = vmatmul.mubr.f32.gmra.mxu1 %v1109_v32 }
 0x135   :  { %412 = vmatprep.mubr.f32.mxu1 %v1304_v0 }
 0x138   :  { %413 = vmatmul.mubr.f32.gmra.mxu1 %v250_v35 }
 0x139   :  { %418 = vmatprep.mubr.f32.mxu1 %v1304_v0 }
 0x13c   :  { %419 = vmatmul.mubr.f32.gmra.mxu1 %v1112_v34 }
 0x13d   :  { %424 = vmatprep.mubr.f32.mxu1 %v1304_v0 }
 0x140   :  { %425 = vmatmul.mubr.f32.gmra.mxu1 %v260_v37 }
 0x141   :  { %430 = vmatprep.mubr.f32.mxu1 %v1304_v0 }
 0x144   :  { %431 = vmatmul.mubr.f32.gmra.mxu1 %v1115_v36 }
 0x145   :  { %436 = vmatprep.mubr.f32.mxu1 %v1304_v0 }
 0x148   :  { %437 = vmatmul.mubr.f32.gmra.mxu1 %v270_v40 }
 0x149   :  { %442 = vmatprep.mubr.f32.mxu1 %v1304_v0 }
 0x14c   :  { %443 = vmatmul.mubr.f32.gmra.mxu1 %v1118_v38 }
 0x14d   :  { %448 = vmatprep.mubr.f32.mxu1 %v1304_v0 }
 0x150   :  { %449 = vmatmul.mubr.f32.gmra.mxu1 %v280_v43 }
 0x151   :  { %454 = vmatprep.mubr.f32.mxu1 %v1304_v0  ;;  %v290_v0 = vlaneseq }
 0x153   :  { %v291_v2 = vshrl.u32 %v290_v0, 7 }
 0x154   :  { %455 = vmatmul.mubr.f32.gmra.mxu1 %v1121_v42 }
 0x155   :  { %1154 = vmatprep.mubr.f32.mxu1 %v1362_v4  ;;  %v292_v3 = vsub.s32 0, %v291_v2  ;;  %v127_v4 = vld [vmem:[%s1505_s3] sm:$0x3]  ;;  %v296_v5 = vsub.s32 1, %v291_v2 }
 0x157   :  { %v1430_v6 = vrot.slane %v127_v4, %v292_v3  ;;  %v1432_v7 = vrot.slane %v127_v4, %v296_v5 }
 0x1d8   :  { %v366_v8 = vpop.f32.mrf.mxu1 }
 0x1d9   :  { %v367_v9 = vadd.f32 %v366_v8, %v1430_v6 }
 0x1da   :  { %v368_v10 = vpop.f32.mrf.mxu1 }
 0x1db   :  { %v369_v11 = vadd.f32 %v368_v10, %v1432_v7  ;;  %v461_v14 = vmax.f32 %v367_v9, 0.0 }
 0x1dc   :  { %v372_v12 = vpop.f32.mrf.mxu1 }
 0x1dd   :  { %v462_v13 = vmax.f32 %v369_v11, 0.0  ;;  %v373_v15 = vadd.f32 %v372_v12, %v1430_v6 }
 0x1de   :  { %v374_v16 = vpop.f32.mrf.mxu1 }
 0x1df   :  { %v375_v17 = vadd.f32 %v374_v16, %v1432_v7  ;;  %654 = vmatprep.mubr.f32.mxu0 %v462_v13  ;;  %v463_v20 = vmax.f32 %v373_v15, 0.0 }
 0x1e0   :  { %v378_v18 = vpop.f32.mrf.mxu1  ;;  %655 = vmatmul.mubr.f32.vlgmr.msra.gmra.mxu0 %v461_v14 }
 0x1e1   :  { %v464_v19 = vmax.f32 %v375_v17, 0.0  ;;  %v379_v21 = vadd.f32 %v378_v18, %v1430_v6 }
 0x1e2   :  { %v380_v22 = vpop.f32.mrf.mxu1 }
 0x1e3   :  { %v381_v23 = vadd.f32 %v380_v22, %v1432_v7  ;;  %659 = vmatprep.mubr.f32.mxu0 %v464_v19  ;;  %v465_v26 = vmax.f32 %v379_v21, 0.0 }
 0x1e4   :  { %v384_v24 = vpop.f32.mrf.mxu1  ;;  %660 = vmatmul.mubr.f32.gmra.mxu0 %v463_v20 }
 0x1e5   :  { %v466_v25 = vmax.f32 %v381_v23, 0.0  ;;  %v385_v27 = vadd.f32 %v384_v24, %v1430_v6 }
 0x1e6   :  { %v386_v28 = vpop.f32.mrf.mxu1 }
 0x1e7   :  { %v387_v29 = vadd.f32 %v386_v28, %v1432_v7  ;;  %664 = vmatprep.mubr.f32.mxu0 %v466_v25  ;;  %v467_v32 = vmax.f32 %v385_v27, 0.0 }
 0x1e8   :  { %v390_v30 = vpop.f32.mrf.mxu1  ;;  %665 = vmatmul.mubr.f32.gmra.mxu0 %v465_v26 }
 0x1e9   :  { %v468_v31 = vmax.f32 %v387_v29, 0.0  ;;  %v391_v33 = vadd.f32 %v390_v30, %v1430_v6 }
 0x1ea   :  { %v392_v34 = vpop.f32.mrf.mxu1 }
 0x1eb   :  { %v393_v35 = vadd.f32 %v392_v34, %v1432_v7  ;;  %669 = vmatprep.mubr.f32.mxu0 %v468_v31  ;;  %v469_v38 = vmax.f32 %v391_v33, 0.0 }
 0x1ec   :  { %v396_v36 = vpop.f32.mrf.mxu1  ;;  %670 = vmatmul.mubr.f32.gmra.mxu0 %v467_v32 }
 0x1ed   :  { %v470_v37 = vmax.f32 %v393_v35, 0.0  ;;  %v397_v40 = vadd.f32 %v396_v36, %v1430_v6 }
 0x1ee   :  { %v398_v42 = vpop.f32.mrf.mxu1 }
 0x1ef   :  { %v399_v43 = vadd.f32 %v398_v42, %v1432_v7  ;;  %674 = vmatprep.mubr.f32.mxu0 %v470_v37  ;;  %v471_v48 = vmax.f32 %v397_v40, 0.0 }
 0x1f0   :  { %v402_v44 = vpop.f32.mrf.mxu1  ;;  %675 = vmatmul.mubr.f32.gmra.mxu0 %v469_v38 }
 0x1f1   :  { %v472_v46 = vmax.f32 %v399_v43, 0.0  ;;  %v403_v49 = vadd.f32 %v402_v44, %v1430_v6 }
 0x1f2   :  { %v404_v61 = vpop.f32.mrf.mxu1 }
 0x1f3   :  { %v405_v62 = vadd.f32 %v404_v61, %v1432_v7  ;;  %679 = vmatprep.mubr.f32.mxu0 %v472_v46  ;;  %v473_v0 = vmax.f32 %v403_v49, 0.0 }
 0x1f4   :  { %v408_v63 = vpop.f32.mrf.mxu1  ;;  %680 = vmatmul.mubr.f32.gmra.mxu0 %v471_v48 }
 0x1f5   :  { %v474_v1 = vmax.f32 %v405_v62, 0.0  ;;  %v409_v2 = vadd.f32 %v408_v63, %v1430_v6 }
 0x1f6   :  { %v410_v3 = vpop.f32.mrf.mxu1 }
 0x1f7   :  { %v411_v4 = vadd.f32 %v410_v3, %v1432_v7  ;;  %684 = vmatprep.mubr.f32.mxu0 %v474_v1  ;;  %v475_v9 = vmax.f32 %v409_v2, 0.0 }
 0x1f8   :  { %v414_v5 = vpop.f32.mrf.mxu1  ;;  %685 = vmatmul.mubr.f32.gmra.mxu0 %v473_v0 }
 0x1f9   :  { %v476_v8 = vmax.f32 %v411_v4, 0.0  ;;  %v415_v10 = vadd.f32 %v414_v5, %v1430_v6 }
 0x1fa   :  { %v416_v11 = vpop.f32.mrf.mxu1 }
 0x1fb   :  { %v417_v12 = vadd.f32 %v416_v11, %v1432_v7  ;;  %689 = vmatprep.mubr.f32.mxu0 %v476_v8  ;;  %v477_v15 = vmax.f32 %v415_v10, 0.0 }
 0x1fc   :  { %v420_v13 = vpop.f32.mrf.mxu1  ;;  %690 = vmatmul.mubr.f32.gmra.mxu0 %v475_v9 }
 0x1fd   :  { %v478_v14 = vmax.f32 %v417_v12, 0.0  ;;  %v421_v16 = vadd.f32 %v420_v13, %v1430_v6 }
 0x1fe   :  { %v422_v17 = vpop.f32.mrf.mxu1 }
 0x1ff   :  { %v423_v18 = vadd.f32 %v422_v17, %v1432_v7  ;;  %694 = vmatprep.mubr.f32.mxu0 %v478_v14  ;;  %v479_v21 = vmax.f32 %v421_v16, 0.0 }
 0x200   :  { %v426_v19 = vpop.f32.mrf.mxu1  ;;  %695 = vmatmul.mubr.f32.gmra.mxu0 %v477_v15 }
 0x201   :  { %v480_v20 = vmax.f32 %v423_v18, 0.0  ;;  %v427_v22 = vadd.f32 %v426_v19, %v1430_v6 }
 0x202   :  { %v428_v23 = vpop.f32.mrf.mxu1 }
 0x203   :  { %v429_v24 = vadd.f32 %v428_v23, %v1432_v7  ;;  %699 = vmatprep.mubr.f32.mxu0 %v480_v20  ;;  %v481_v27 = vmax.f32 %v427_v22, 0.0 }
 0x204   :  { %v432_v25 = vpop.f32.mrf.mxu1  ;;  %700 = vmatmul.mubr.f32.gmra.mxu0 %v479_v21 }
 0x205   :  { %v482_v26 = vmax.f32 %v429_v24, 0.0  ;;  %v433_v28 = vadd.f32 %v432_v25, %v1430_v6 }
 0x206   :  { %v434_v29 = vpop.f32.mrf.mxu1 }
 0x207   :  { %v435_v30 = vadd.f32 %v434_v29, %v1432_v7  ;;  %704 = vmatprep.mubr.f32.mxu0 %v482_v26  ;;  %v483_v33 = vmax.f32 %v433_v28, 0.0 }
 0x208   :  { %v438_v31 = vpop.f32.mrf.mxu1  ;;  %705 = vmatmul.mubr.f32.gmra.mxu0 %v481_v27 }
 0x209   :  { %v484_v32 = vmax.f32 %v435_v30, 0.0  ;;  %v439_v34 = vadd.f32 %v438_v31, %v1430_v6 }
 0x20a   :  { %v440_v35 = vpop.f32.mrf.mxu1 }
 0x20b   :  { %v441_v36 = vadd.f32 %v440_v35, %v1432_v7  ;;  %709 = vmatprep.mubr.f32.mxu0 %v484_v32  ;;  %v485_v40 = vmax.f32 %v439_v34, 0.0 }
 0x20c   :  { %v444_v37 = vpop.f32.mrf.mxu1  ;;  %710 = vmatmul.mubr.f32.gmra.mxu0 %v483_v33 }
 0x20d   :  { %v486_v38 = vmax.f32 %v441_v36, 0.0  ;;  %v445_v42 = vadd.f32 %v444_v37, %v1430_v6 }
 0x20e   :  { %v446_v43 = vpop.f32.mrf.mxu1 }
 0x20f   :  { %v447_v44 = vadd.f32 %v446_v43, %v1432_v7  ;;  %714 = vmatprep.mubr.f32.mxu0 %v486_v38  ;;  %v487_v49 = vmax.f32 %v445_v42, 0.0 }
 0x210   :  { %v450_v46 = vpop.f32.mrf.mxu1  ;;  %715 = vmatmul.mubr.f32.gmra.mxu0 %v485_v40 }
 0x211   :  { %v488_v48 = vmax.f32 %v447_v44, 0.0  ;;  %v451_v61 = vadd.f32 %v450_v46, %v1430_v6 }
 0x212   :  { %v452_v62 = vpop.f32.mrf.mxu1 }
 0x213   :  { %v453_v63 = vadd.f32 %v452_v62, %v1432_v7  ;;  %719 = vmatprep.mubr.f32.mxu0 %v488_v48  ;;  %v489_v2 = vmax.f32 %v451_v61, 0.0 }
 0x214   :  { %v456_v1 = vpop.f32.mrf.mxu1  ;;  %720 = vmatmul.mubr.f32.gmra.mxu0 %v487_v49 }
 0x215   :  { %v490_v0 = vmax.f32 %v453_v63, 0.0  ;;  %v457_v3 = vadd.f32 %v456_v1, %v1430_v6 }
 0x216   :  { %v458_v4 = vpop.f32.mrf.mxu1 }
 0x217   :  { %v459_v5 = vadd.f32 %v458_v4, %v1432_v7  ;;  %724 = vmatprep.mubr.f32.mxu0 %v490_v0  ;;  %v491_v9 = vmax.f32 %v457_v3, 0.0 }
 0x218   :  { %725 = vmatmul.mubr.f32.gmra.mxu0 %v489_v2 }
 0x219   :  { %v492_v8 = vmax.f32 %v459_v5, 0.0 }
 0x21b   :  { %729 = vmatprep.mubr.f32.mxu0 %v492_v8 }
 0x21c   :  { %730 = vmatmul.mubr.f32.gmra.mxu0 %v491_v9 }
 0x2a0   :  { %v986_v10 = vpop.f32.mrf.mxu0 }
 0x2a2   :  { %v987_v11 = vpop.f32.mrf.mxu0 }
 0x2a3   :  { %v1466_v12 = vadd.f32 %v987_v11, %v986_v10 }
 0x2a4   :  { %v989_v13 = vpop.f32.mrf.mxu0 }
 0x2a6   :  { %v990_v14 = vpop.f32.mrf.mxu0 }
 0x2a7   :  { %v1468_v15 = vadd.f32 %v990_v14, %v989_v13 }
 0x2a8   :  { %v992_v16 = vpop.f32.mrf.mxu0 }
 0x2aa   :  { %v993_v17 = vpop.f32.mrf.mxu0 }
 0x2ab   :  { %v1470_v6 = vadd.f32 %v993_v17, %v992_v16 }
 0x2ac   :  { %v995_v18 = vpop.f32.mrf.mxu0 }
 0x2ae   :  { %v996_v7 = vpop.f32.mrf.mxu0 }
 0x2af   :  { %v997_v19 = vadd.f32 %v996_v7, %v995_v18 }
 0x2b0   :  { %v998_v20 = vpop.f32.mrf.mxu0 }
 0x2b2   :  { %v999_v21 = vpop.f32.mrf.mxu0 }
 0x2b3   :  { %v1000_v22 = vadd.f32 %v999_v21, %v998_v20 }
 0x2b4   :  { %v1001_v23 = vpop.f32.mrf.mxu0 }
 0x2b6   :  { %v1002_v24 = vpop.f32.mrf.mxu0 }
 0x2b7   :  { %v1003_v8 = vadd.f32 %v1002_v24, %v1001_v23 }
 0x2b8   :  { %v1004_v25 = vpop.f32.mrf.mxu0 }
 0x2ba   :  { %v1005_v26 = vpop.f32.mrf.mxu0 }
 0x2bb   :  { %v1006_v5 = vadd.f32 %v1005_v26, %v1004_v25 }
 0x2bc   :  { %v1007_v27 = vpop.f32.mrf.mxu0 }
 0x2be   :  { %v1008_v28 = vpop.f32.mrf.mxu0 }
 0x2bf   :  { %v1009_v4 = vadd.f32 %v1008_v28, %v1007_v27 }
 0x2c0   :  { %v1010_v29 = vpop.f32.mrf.mxu0 }
 0x2c2   :  { %v1011_v30 = vpop.f32.mrf.mxu0 }
 0x2c3   :  { %v1012_v3 = vadd.f32 %v1011_v30, %v1010_v29 }
 0x2c4   :  { %v1013_v31 = vpop.f32.mrf.mxu0 }
 0x2c6   :  { %v1014_v32 = vpop.f32.mrf.mxu0 }
 0x2c7   :  { %v1015_v2 = vadd.f32 %v1014_v32, %v1013_v31 }
 0x2c8   :  { %v1016_v33 = vpop.f32.mrf.mxu0 }
 0x2ca   :  { %v1017_v34 = vpop.f32.mrf.mxu0 }
 0x2cb   :  { %v1018_v0 = vadd.f32 %v1017_v34, %v1016_v33 }
 0x2cc   :  { %v1019_v35 = vpop.f32.mrf.mxu0 }
 0x2ce   :  { %v1020_v36 = vpop.f32.mrf.mxu0 }
 0x2cf   :  { %v1021_v1 = vadd.f32 %v1020_v36, %v1019_v35 }
 0x2d0   :  { %v1022_v37 = vpop.f32.mrf.mxu0 }
 0x2d2   :  { %v1023_v38 = vpop.f32.mrf.mxu0 }
 0x2d3   :  { %v1024_v63 = vadd.f32 %v1023_v38, %v1022_v37 }
 0x2d4   :  { %v1025_v40 = vpop.f32.mrf.mxu0 }
 0x2d6   :  { %v1026_v42 = vpop.f32.mrf.mxu0 }
 0x2d7   :  { %v1027_v62 = vadd.f32 %v1026_v42, %v1025_v40 }
 0x2d8   :  { %v1028_v43 = vpop.f32.mrf.mxu0 }
 0x2da   :  { %v1029_v44 = vpop.f32.mrf.mxu0 }
 0x2db   :  { %v1030_v61 = vadd.f32 %v1029_v44, %v1028_v43 }
 0x2dc   :  { %v1031_v46 = vpop.f32.mrf.mxu0 }
 0x2de   :  { %v1032_v48 = vpop.f32.mrf.mxu0 }
 0x2df   :  { %v1033_v49 = vadd.f32 %v1032_v48, %v1031_v46 }
 0x2e1   :  { %1122 = vmatprep.subr.mxu1 %v1033_v49 }
 0x2e2   :  { %1123 = vmatpush3.msra.mxu1 %v1033_v49 }
 0x2e3   :  { %1124 = vmatprep.subr.mxu1 %v1030_v61 }
 0x2e4   :  { %1125 = vmatpush3.msra.mxu1 %v1030_v61 }
 0x2e5   :  { %1126 = vmatprep.subr.mxu1 %v1027_v62 }
 0x2e6   :  { %1127 = vmatpush3.msra.mxu1 %v1027_v62 }
 0x2e7   :  { %1128 = vmatprep.subr.mxu1 %v1024_v63 }
 0x2e8   :  { %1129 = vmatpush3.msra.mxu1 %v1024_v63 }
 0x2e9   :  { %1130 = vmatprep.subr.mxu1 %v1021_v1 }
 0x2ea   :  { %1131 = vmatpush3.msra.mxu1 %v1021_v1 }
 0x2eb   :  { %1132 = vmatprep.subr.mxu1 %v1018_v0 }
 0x2ec   :  { %1133 = vmatpush3.msra.mxu1 %v1018_v0 }
 0x2ed   :  { %1134 = vmatprep.subr.mxu1 %v1015_v2 }
 0x2ee   :  { %1135 = vmatpush3.msra.mxu1 %v1015_v2 }
 0x2ef   :  { %1136 = vmatprep.subr.mxu1 %v1012_v3 }
 0x2f0   :  { %1137 = vmatpush3.msra.mxu1 %v1012_v3 }
 0x2f1   :  { %1138 = vmatprep.subr.mxu1 %v1009_v4 }
 0x2f2   :  { %1139 = vmatpush3.msra.mxu1 %v1009_v4 }
 0x2f3   :  { %1140 = vmatprep.subr.mxu1 %v1006_v5 }
 0x2f4   :  { %1141 = vmatpush3.msra.mxu1 %v1006_v5 }
 0x2f5   :  { %1142 = vmatprep.subr.mxu1 %v1003_v8 }
 0x2f6   :  { %1143 = vmatpush3.msra.mxu1 %v1003_v8 }
 0x2f7   :  { %1144 = vmatprep.subr.mxu1 %v1000_v22 }
 0x2f8   :  { %1145 = vmatpush3.msra.mxu1 %v1000_v22 }
 0x2f9   :  { %1146 = vmatprep.subr.mxu1 %v997_v19 }
 0x2fa   :  { %1147 = vmatpush3.msra.mxu1 %v997_v19 }
 0x2fb   :  { %1148 = vmatprep.subr.mxu1 %v1470_v6 }
 0x2fc   :  { %1149 = vmatpush3.msra.mxu1 %v1470_v6 }
 0x2fd   :  { %1150 = vmatprep.subr.mxu1 %v1468_v15 }
 0x2fe   :  { %1151 = vmatpush3.msra.mxu1 %v1468_v15 }
 0x2ff   :  { %1152 = vmatprep.subr.mxu1 %v1466_v12 }
 0x300   :  { %1153 = vmatpush3.msra.mxu1 %v1466_v12 }
 0x301   :  { %1155 = vmatmul.mubr.f32.vlgmr.msra.gmra.mxu1 %v1365_v39  ;;  %v921_v39 = vld [vmem:[%s1507_s5] ss:$0 sm:$0xff]  ;;  %s1305_s5 = smov [#allocation11]  }
 0x302   :  { %1157 = vmatprep.mubr.f32.mxu1 %v1367_v41  ;;  %s907_s20 = sshll.u32 %s1305_s5, 4  ;;  %s908_s20 = int_to_ptr.vmem [resolvable:$true] %s907_s20 }
 0x303   :  { %s1268_s21 = scalar_lea.vmem %s908_s20, 2048  ;;  %p1273_p7 = scmp.lt.s32.totalorder %s908_s20, %s908_s20 }
 0x304   :  { %p1269_p6 = scmp.ne.s32.totalorder %s908_s20, %s1268_s21  ;;  %p1274_p8 = scmp.lt.s32.totalorder %s1268_s21, %s1268_s21 }
 0x305   :  { %1158 = vmatmul.mubr.f32.gmra.mxu1 %v1371_v45 }
 0x306   :  { %1160 = vmatprep.mubr.f32.mxu1 %v1373_v47  ;;  %p1275_p9 = por %p1274_p8, %p1273_p7 }
 0x308   :  { %p1276_p10 = pnand %p1275_p9, %p1269_p6 }
 0x309   :  { %1161 = vmatmul.mubr.f32.gmra.mxu1 %v1377_v50 }
 0x30a   :  { %1163 = vmatprep.mubr.f32.mxu1 %v1379_v51 }
 0x30d   :  { %1164 = vmatmul.mubr.f32.gmra.mxu1 %v1383_v52 }
 0x30e   :  { %1166 = vmatprep.mubr.f32.mxu1 %v1385_v53 }
 0x311   :  { %1167 = vmatmul.mubr.f32.gmra.mxu1 %v1389_v54 }
 0x312   :  { %1169 = vmatprep.mubr.f32.mxu1 %v1391_v55 }
 0x315   :  { %1170 = vmatmul.mubr.f32.gmra.mxu1 %v1395_v56 }
 0x316   :  { %1172 = vmatprep.mubr.f32.mxu1 %v1397_v57 }
 0x319   :  { %1173 = vmatmul.mubr.f32.gmra.mxu1 %v1401_v58 }
 0x31a   :  { %1175 = vmatprep.mubr.f32.mxu1 %v1403_v59 }
 0x31d   :  { %1176 = vmatmul.mubr.f32.gmra.mxu1 %v1407_v60 }
 0x3c1   :  { %v1156_v41 = vpop.f32.mrf.mxu1 }
 0x3c2   :  { %v813_v45 = vadd.f32 %v1156_v41, %v921_v39 }
 0x3c3   :  { %v807_v47 = vpop.f32.mrf.mxu1 }
 0x3c4   :  { %887 = vst [vmem:[#allocation11 + $0x8] sm:$0xff] %v813_v45  ;;  %v808_v50 = vadd.f32 %v921_v39, %v807_v47 }
 0x3c5   :  { %v1159_v51 = vpop.f32.mrf.mxu1 }
 0x3c6   :  { %886 = vst [vmem:[#allocation11] sm:$0xff] %v808_v50  ;;  %v823_v52 = vadd.f32 %v1159_v51, %v921_v39 }
 0x3c7   :  { %v817_v53 = vpop.f32.mrf.mxu1 }
 0x3c8   :  { %889 = vst [vmem:[#allocation11 + $0x18] sm:$0xff] %v823_v52  ;;  %v818_v54 = vadd.f32 %v921_v39, %v817_v53 }
 0x3c9   :  { %v1162_v55 = vpop.f32.mrf.mxu1 }
 0x3ca   :  { %888 = vst [vmem:[#allocation11 + $0x10] sm:$0xff] %v818_v54  ;;  %v833_v56 = vadd.f32 %v1162_v55, %v921_v39 }
 0x3cb   :  { %v827_v57 = vpop.f32.mrf.mxu1 }
 0x3cc   :  { %891 = vst [vmem:[#allocation11 + $0x28] sm:$0xff] %v833_v56  ;;  %v828_v58 = vadd.f32 %v921_v39, %v827_v57 }
 0x3cd   :  { %v1165_v59 = vpop.f32.mrf.mxu1 }
 0x3ce   :  { %890 = vst [vmem:[#allocation11 + $0x20] sm:$0xff] %v828_v58  ;;  %v843_v60 = vadd.f32 %v1165_v59, %v921_v39 }
 0x3cf   :  { %v837_v9 = vpop.f32.mrf.mxu1 }
 0x3d0   :  { %893 = vst [vmem:[#allocation11 + $0x38] sm:$0xff] %v843_v60  ;;  %v838_v10 = vadd.f32 %v921_v39, %v837_v9 }
 0x3d1   :  { %v1168_v11 = vpop.f32.mrf.mxu1 }
 0x3d2   :  { %892 = vst [vmem:[#allocation11 + $0x30] sm:$0xff] %v838_v10  ;;  %v853_v12 = vadd.f32 %v1168_v11, %v921_v39 }
 0x3d3   :  { %v847_v13 = vpop.f32.mrf.mxu1 }
 0x3d4   :  { %895 = vst [vmem:[#allocation11 + $0x48] sm:$0xff] %v853_v12  ;;  %v848_v14 = vadd.f32 %v921_v39, %v847_v13 }
 0x3d5   :  { %v1171_v15 = vpop.f32.mrf.mxu1 }
 0x3d6   :  { %894 = vst [vmem:[#allocation11 + $0x40] sm:$0xff] %v848_v14  ;;  %v863_v16 = vadd.f32 %v1171_v15, %v921_v39 }
 0x3d7   :  { %v857_v17 = vpop.f32.mrf.mxu1 }
 0x3d8   :  { %897 = vst [vmem:[#allocation11 + $0x58] sm:$0xff] %v863_v16  ;;  %v858_v6 = vadd.f32 %v921_v39, %v857_v17 }
 0x3d9   :  { %v1174_v18 = vpop.f32.mrf.mxu1 }
 0x3da   :  { %896 = vst [vmem:[#allocation11 + $0x50] sm:$0xff] %v858_v6  ;;  %v873_v7 = vadd.f32 %v1174_v18, %v921_v39 }
 0x3db   :  { %v867_v19 = vpop.f32.mrf.mxu1 }
 0x3dc   :  { %899 = vst [vmem:[#allocation11 + $0x68] sm:$0xff] %v873_v7  ;;  %v868_v20 = vadd.f32 %v921_v39, %v867_v19 }
 0x3dd   :  { %v1177_v21 = vpop.f32.mrf.mxu1 }
 0x3de   :  { %898 = vst [vmem:[#allocation11 + $0x60] sm:$0xff] %v868_v20  ;;  %v883_v22 = vadd.f32 %v1177_v21, %v921_v39 }
 0x3df   :  { %v877_v23 = vpop.f32.mrf.mxu1 }
 0x3e0   :  { %901 = vst [vmem:[#allocation11 + $0x78] sm:$0xff] %v883_v22  ;;  %v878_v24 = vadd.f32 %v921_v39, %v877_v23 }
 0x3e2   :  { %900 = vst [vmem:[#allocation11 + $0x70] sm:$0xff] %v878_v24 }
 0x3e3   :  { %1279 = shalt.err (!%p1276_p10)
}
 0x3e4   :  { %913 = dma.vmem_to_hbm [thread:$0]  %s908_s20, 2048, %s1508_s6, [#allocation5], %s1298_s26, %s1298_s26, %s1299_s27  }
 0x3e5   :  { %1294 = dma.done.wait [#allocation5], 2048  }
 0x3e6   :  { %1295 = vsyncadd [#allocation5], 4294965248 }
 0x3e7   :  { %917 = vsyncpa [#allocation4], 1 }
 0x3e8   :  { %918 = vsyncpa [#allocation7], 1 }
 0x3e9   :  { %919 = vsyncpa [#allocation10], 1 }
 0x3ea   :  { %920 = vsyncpa [#allocation5], 1 }

</bundles_post_ra>
